<compile_context>
chip_gen: v7x
topology: tpu7x:2x2x1
jax: 0.10.0
libtpu: 0.0.40
codegen_flags: <defaults>
</compile_context>

<pallas_src>
import functools

import jax
import jax.numpy as jnp
from jax import lax
from jax.experimental import pallas as pl
from jax.experimental.pallas import tpu as pltpu


_SMALL_N_MAX = 64          # widest softmax axis handled by the unrolled pairwise path
_PAIRWISE_ELEMS = 16384    # target n * lane_tile (z + acc stay ~32 f32 vregs)
_BISECT_ELEMS = 131072     # target row_tile * n f32 elements per block
_BISECT_ITERS = 24         # bracket shrinks to (1-sigma) * 2^-24 (< f32 eps of z-tau)
_LANE = 128
_SUBLANE = 8


def _round_up(x, m):
    return (x + m - 1) // m * m


def _vmem_limit_bytes():
    # Generation-aware VMEM budget: ~half the physical VMEM (v7x: 64 MiB/TC,
    # v5e/v6e: 128 MiB), never below 32 MiB, capped at 64 MiB.
    try:
        cap = int(pltpu.get_tpu_info().vmem_capacity_bytes)
    except Exception:  # info unavailable -> conservative default
        cap = 128 * 1024 * 1024
    return int(min(max(cap // 2, 32 * 1024 * 1024), 64 * 1024 * 1024))


def _pick_tile(rows, tm_max, align):
    """Row/lane tile <= tm_max, `align`-aligned, preferring an EVEN number of
    grid steps whenever the row axis is split (v7x megacore has 2 TensorCores;
    an odd step count idles one core for a slice of the kernel)."""
    tm_max = max(align, tm_max // align * align)
    if rows <= align:
        return rows                                    # single sub-aligned full block
    g = pl.cdiv(rows, tm_max)
    if g == 1:
        if rows <= 2 * align:
            return min(tm_max, _round_up(rows, align))  # too little work to split
        g = 2                                           # give both TCs a share
    elif g % 2:
        g += 1                                          # avoid odd step counts
    return min(tm_max, _round_up(pl.cdiv(rows, g), align))


# ----------------------------------------------------------------------------
# Small-n path: lane-dense, sort-free pairwise support search.
# ----------------------------------------------------------------------------
def _pairwise_core(zt, budget, inv_scale):
    """Sparsegen on a lane-dense transposed tile.

    zt: (n, m) f32 -- the n logits on sublanes, independent rows on lanes.
    Shift-invariant: acc, is_gt, k and (z - taus) are unchanged under z -> z+c,
    so no max subtraction is needed.
    """
    n = zt.shape[0]
    acc = jnp.zeros_like(zt)          # acc_i = sum_j relu(z_j - z_i) = S_i - rank_i*z_i
    for j in range(n):                # n static & small (<= _SMALL_N_MAX): unrolled
        acc = acc + jnp.maximum(zt[j:j + 1, :] - zt, 0.0)
    # acc < budget  <=>  budget + rank*z > S : tie-closed support prefix.
    is_gt = acc < budget
    k = jnp.sum(jnp.where(is_gt, 1.0, 0.0), axis=0, keepdims=True)
    zs_sum = jnp.sum(jnp.where(is_gt, zt, 0.0), axis=0, keepdims=True)
    taus = (zs_sum - budget) / k      # (1, m) row scalars: exact divide is negligible
    return jnp.maximum(zt - taus, 0.0) * inv_scale


def _sparsegen_pairwise_t_kernel(x_ref, o_ref, *, sigma, inv_scale):
    # x_ref / o_ref: (n, tm) transposed slab -- rows on lanes (lane dense).
    z = x_ref[...].astype(jnp.float32)
    o_ref[...] = _pairwise_core(z, 1.0 - sigma, inv_scale).astype(o_ref.dtype)


def _sparsegen_pairwise_block_kernel(x_ref, o_ref, *, sigma, inv_scale):
    # x_ref / o_ref: (rows, n) natural layout, whole problem in one block.
    # Transpose in-kernel (XLU rides an otherwise idle slot) so the unrolled
    # pairwise loop runs lane dense; removes the host transpose round trips.
    z = jnp.transpose(x_ref[...].astype(jnp.float32))          # (n, rows)
    out_t = _pairwise_core(z, 1.0 - sigma, inv_scale)
    o_ref[...] = jnp.transpose(out_t).astype(o_ref.dtype)


def _sparsegen_small_n(x2, *, n, sigma, inv_scale):
    rows = x2.shape[0]
    itemsize = jnp.dtype(x2.dtype).itemsize
    cost = pl.CostEstimate(flops=3 * n * n * rows, transcendentals=0,
                           bytes_accessed=2 * itemsize * rows * n)
    vmem = _vmem_limit_bytes()

    if rows * n <= _PAIRWISE_ELEMS:
        # Tiny problem (the shipped config is 128 x 16): one block, natural
        # layout, in-kernel transpose; no host transpose / pad / slice.
        return pl.pallas_call(
            functools.partial(_sparsegen_pairwise_block_kernel, sigma=sigma,
                              inv_scale=inv_scale),
            out_shape=jax.ShapeDtypeStruct((rows, n), x2.dtype),
            grid_spec=pltpu.PrefetchScalarGridSpec(
                num_scalar_prefetch=0,
                grid=(1,),
                in_specs=[pl.BlockSpec((rows, n), lambda i: (0, 0))],
                out_specs=pl.BlockSpec((rows, n), lambda i: (0, 0)),
            ),
            compiler_params=pltpu.CompilerParams(
                dimension_semantics=("arbitrary",),
                vmem_limit_bytes=vmem),
            cost_estimate=cost,
        )(x2)

    # Larger row counts: lane-dense transposed slab (rows -> lanes), tiled
    # along the lane axis; partial tail block handled by Pallas (no host pad).
    tm = _pick_tile(rows, min(1024, _PAIRWISE_ELEMS // n), _LANE)
    xt = x2.T
    out_t = pl.pallas_call(
        functools.partial(_sparsegen_pairwise_t_kernel, sigma=sigma,
                          inv_scale=inv_scale),
        out_shape=jax.ShapeDtypeStruct((n, rows), x2.dtype),
        grid_spec=pltpu.PrefetchScalarGridSpec(
            num_scalar_prefetch=0,
            grid=(pl.cdiv(rows, tm),),
            in_specs=[pl.BlockSpec((n, tm), lambda i: (0, i))],
            out_specs=pl.BlockSpec((n, tm), lambda i: (0, i)),
        ),
        compiler_params=pltpu.CompilerParams(
            dimension_semantics=("parallel",),
            vmem_limit_bytes=vmem),
        cost_estimate=cost,
    )(xt)
    return out_t.T


# ----------------------------------------------------------------------------
# Large-n path: O(n * iters) tau bisection + exact support refinement.
# ----------------------------------------------------------------------------
def _sparsegen_bisect_kernel(x_ref, o_ref, *, sigma, inv_scale, iters):
    # x_ref / o_ref: (tm, n) -- rows on sublanes, logits on lanes.
    z = x_ref[...].astype(jnp.float32)
    z = z - jnp.max(z, axis=-1, keepdims=True)          # per-row max == 0
    budget = 1.0 - sigma

    # f(tau) = sum_i max(0, z_i - tau): f(-budget) >= budget >= f(0) = 0 and f
    # is decreasing, so tau* is bracketed by [-budget, 0].
    lo = jnp.full(z.shape[:-1] + (1,), -budget, dtype=jnp.float32)
    hi = jnp.zeros_like(lo)

    def body(_, carry):
        lo, hi = carry
        mid = 0.5 * (lo + hi)
        f = jnp.sum(jnp.maximum(z - mid, 0.0), axis=-1, keepdims=True)
        above = f > budget
        return jnp.where(above, mid, lo), jnp.where(above, hi, mid)

    lo, _ = lax.fori_loop(0, iters, body, (lo, hi), unroll=4)

    # lo <= tau* always, so {z > lo} covers the true support; recover tau from
    # that support with one exact full-width pass.
    supp = z > lo
    k = jnp.sum(jnp.where(supp, 1.0, 0.0), axis=-1, keepdims=True)
    zs_sum = jnp.sum(jnp.where(supp, z, 0.0), axis=-1, keepdims=True)
    taus = (zs_sum - budget) / k
    o_ref[...] = (jnp.maximum(z - taus, 0.0) * inv_scale).astype(o_ref.dtype)


def _sparsegen_large_n(x2, *, n, sigma, inv_scale):
    rows = x2.shape[0]
    # Lane density: for 64 < n < 128 pad the logit axis to 128 with a large
    # negative constant (never enters the support, contributes 0 everywhere)
    # so every sweep of the bisection loop runs on full vregs / unmasked vst.
    n_pad = n
    if n < _LANE:
        n_pad = _LANE
        x2 = jnp.pad(x2, ((0, 0), (0, n_pad - n)), constant_values=-1e30)

    # TODO(synk): extremely large n (block >> VMEM budget) would need chunking
    # of the logit axis inside the kernel; not needed for shapes exercised here.
    tm = _pick_tile(rows, max(_SUBLANE, _BISECT_ELEMS // n_pad), _SUBLANE)
    itemsize = jnp.dtype(x2.dtype).itemsize
    cost = pl.CostEstimate(flops=3 * _BISECT_ITERS * n_pad * rows,
                           transcendentals=0,
                           bytes_accessed=2 * itemsize * rows * n_pad)

    out = pl.pallas_call(
        functools.partial(_sparsegen_bisect_kernel, sigma=sigma,
                          inv_scale=inv_scale, iters=_BISECT_ITERS),
        out_shape=jax.ShapeDtypeStruct((rows, n_pad), x2.dtype),
        grid_spec=pltpu.PrefetchScalarGridSpec(
            num_scalar_prefetch=0,
            grid=(pl.cdiv(rows, tm),),
            in_specs=[pl.BlockSpec((tm, n_pad), lambda i: (i, 0))],
            out_specs=pl.BlockSpec((tm, n_pad), lambda i: (i, 0)),
        ),
        compiler_params=pltpu.CompilerParams(
            dimension_semantics=("parallel",),
            vmem_limit_bytes=_vmem_limit_bytes()),
        cost_estimate=cost,
    )(x2)
    return out[:, :n] if n_pad != n else out


# ----------------------------------------------------------------------------
# Public wrapper (matches the PyTorch module's forward semantics).
# ----------------------------------------------------------------------------
def sparsegen(x, *, dim=-1, sigma=0.0):
    """Pallas forward of the PyTorch Sparsegen module (default SparseMax).

    `net` defaults to nn.Sequential() (identity) in the module, which is what
    is implemented here.  Requires sigma < 1.
    """
    # TODO(synk): an arbitrary `net` submodule is not translated (identity only).
    if not sigma < 1.0:
        raise ValueError("Sparsegen requires sigma < 1 (k > 0 and 1/(1-sigma) defined).")
    orig_shape = x.shape
    n = x.shape[dim]
    # torch's `input.view(-1, input.size(dim))` groups elements in memory order
    # in chunks of size(dim); a row-major reshape reproduces that exactly.
    x2 = x.reshape(-1, n)
    inv_scale = float(1.0 / (1.0 - sigma))

    if n <= _SMALL_N_MAX:
        out2 = _sparsegen_small_n(x2, n=n, sigma=float(sigma), inv_scale=inv_scale)
    else:
        out2 = _sparsegen_large_n(x2, n=n, sigma=float(sigma), inv_scale=inv_scale)
    return out2.reshape(orig_shape)


def _sparsegen_ref(x, *, sigma=0.0):
    """Pure-JAX reference mirroring the PyTorch code (explicit sort)."""
    n = x.shape[-1]
    x2 = x.reshape(-1, n).astype(jnp.float32)
    x2 = x2 - jnp.max(x2, axis=-1, keepdims=True)
    zs = jnp.sort(x2, axis=-1)[:, ::-1]
    trange = jnp.arange(1, n + 1, dtype=jnp.float32)[None, :]
    bound = 1.0 - sigma + trange * zs
    cs = jnp.cumsum(zs, axis=-1)
    is_gt = (bound > cs).astype(jnp.float32)
    k = jnp.max(is_gt * trange, axis=-1, keepdims=True)
    taus = (jnp.sum(is_gt * zs, axis=-1, keepdims=True) - 1.0 + sigma) / k
    out = jnp.maximum(0.0, (x2 - taus) / (1.0 - sigma))
    return out.reshape(x.shape)


if __name__ == "__main__":
    key = jax.random.PRNGKey(0)
    k1, k2, k3, k4 = jax.random.split(key, 4)

    # Shipped config: NCHW-ish input, sparsemax over the last dim
    # (rows=128, n=16 -> single-block pairwise path with in-kernel transpose).
    x_small = jax.random.normal(k1, (2, 4, 16, 16), dtype=jnp.float32)
    out_small = jax.block_until_ready(sparsegen(x_small, sigma=0.0))
    ref_small = _sparsegen_ref(x_small, sigma=0.0)
    assert out_small.shape == x_small.shape
    assert jnp.allclose(out_small, ref_small, atol=1e-5, rtol=1e-5), "small-n mismatch"
    assert jnp.allclose(out_small.reshape(-1, 16).sum(-1), 1.0, atol=1e-5)

    # Same path with nonzero sigma (Sparsegen proper).
    out_sig = jax.block_until_ready(sparsegen(x_small, sigma=0.3))
    ref_sig = _sparsegen_ref(x_small, sigma=0.3)
    assert jnp.allclose(out_sig, ref_sig, atol=1e-5, rtol=1e-5), "sigma path mismatch"

    # Many rows, n=16 -> transposed multi-block pairwise path with a partial
    # (cdiv) tail block: 1200 rows, lane tile 640, grid of 2.
    x_rows = jax.random.normal(k3, (4, 300, 16), dtype=jnp.float32)
    out_rows = jax.block_until_ready(sparsegen(x_rows, sigma=0.0))
    ref_rows = _sparsegen_ref(x_rows, sigma=0.0)
    assert jnp.allclose(out_rows, ref_rows, atol=1e-5, rtol=1e-5), "tiled pairwise mismatch"

    # 64 < n < 128 -> lane-padded (to 128) bisection path.
    x_pad = jax.random.normal(k4, (2, 8, 96), dtype=jnp.float32)
    out_pad = jax.block_until_ready(sparsegen(x_pad, sigma=0.0))
    ref_pad = _sparsegen_ref(x_pad, sigma=0.0)
    assert jnp.allclose(out_pad, ref_pad, atol=1e-4, rtol=1e-4), "padded bisect mismatch"

    # Wide-logit config exercising the O(n * iters) bisection path (n = 512).
    x_big = jax.random.normal(k2, (8, 4, 512), dtype=jnp.float32)
    out_big = jax.block_until_ready(sparsegen(x_big, sigma=0.0))
    ref_big = _sparsegen_ref(x_big, sigma=0.0)
    assert out_big.shape == x_big.shape
    assert jnp.allclose(out_big, ref_big, atol=1e-4, rtol=1e-4), "large-n mismatch"
    assert jnp.allclose(out_big.reshape(-1, 512).sum(-1), 1.0, atol=1e-4)

    print("KERNEL_OK")
</pallas_src>

<mosaic_0001>
module attributes {stable_mosaic.version = 11 : i64} {
  func.func @_sparsegen_pairwise_block_kernel(%arg0: i32, %arg1: memref<128x16xf32, #tpu.memory_space<vmem>>, %arg2: memref<128x16xf32, #tpu.memory_space<vmem>>) attributes {dimension_semantics = [#tpu.dimension_semantics<arbitrary>], iteration_bounds = array<i64: 1>, scalar_prefetch = 0 : i64, scratch_operands = 0 : i64, tpu.core_type = #tpu.core_type<tc>, window_params = [{pipeline_mode = #tpu.pipeline_mode<synchronous>, transform_indices = @transform_0, window_bounds = array<i64: 128, 16>}, {pipeline_mode = #tpu.pipeline_mode<synchronous>, transform_indices = @transform_1, window_bounds = array<i64: 128, 16>}]} {
    %c0 = arith.constant 0 : index
    %c0_0 = arith.constant 0 : index
    %0 = vector.load %arg1[%c0, %c0_0] : memref<128x16xf32, #tpu.memory_space<vmem>>, vector<128x16xf32>
    %1 = tpu.transpose %0, [1, 0] : vector<128x16xf32> -> vector<16x128xf32>
    %cst = arith.constant 0.000000e+00 : f32
    %2 = vector.broadcast %cst : f32 to vector<16x128xf32>
    %3 = vector.extract_strided_slice %1 {offsets = [0, 0], sizes = [1, 128], strides = [1, 1]} : vector<16x128xf32> to vector<1x128xf32>
    %4 = vector.broadcast %3 : vector<1x128xf32> to vector<16x128xf32>
    %5 = arith.subf %4, %1 : vector<16x128xf32>
    %cst_1 = arith.constant 0.000000e+00 : f32
    %6 = vector.broadcast %cst_1 : f32 to vector<16x128xf32>
    %7 = arith.maximumf %5, %6 : vector<16x128xf32>
    %8 = arith.addf %2, %7 : vector<16x128xf32>
    %9 = vector.extract_strided_slice %1 {offsets = [1, 0], sizes = [1, 128], strides = [1, 1]} : vector<16x128xf32> to vector<1x128xf32>
    %10 = vector.broadcast %9 : vector<1x128xf32> to vector<16x128xf32>
    %11 = arith.subf %10, %1 : vector<16x128xf32>
    %cst_2 = arith.constant 0.000000e+00 : f32
    %12 = vector.broadcast %cst_2 : f32 to vector<16x128xf32>
    %13 = arith.maximumf %11, %12 : vector<16x128xf32>
    %14 = arith.addf %8, %13 : vector<16x128xf32>
    %15 = vector.extract_strided_slice %1 {offsets = [2, 0], sizes = [1, 128], strides = [1, 1]} : vector<16x128xf32> to vector<1x128xf32>
    %16 = vector.broadcast %15 : vector<1x128xf32> to vector<16x128xf32>
    %17 = arith.subf %16, %1 : vector<16x128xf32>
    %cst_3 = arith.constant 0.000000e+00 : f32
    %18 = vector.broadcast %cst_3 : f32 to vector<16x128xf32>
    %19 = arith.maximumf %17, %18 : vector<16x128xf32>
    %20 = arith.addf %14, %19 : vector<16x128xf32>
    %21 = vector.extract_strided_slice %1 {offsets = [3, 0], sizes = [1, 128], strides = [1, 1]} : vector<16x128xf32> to vector<1x128xf32>
    %22 = vector.broadcast %21 : vector<1x128xf32> to vector<16x128xf32>
    %23 = arith.subf %22, %1 : vector<16x128xf32>
    %cst_4 = arith.constant 0.000000e+00 : f32
    %24 = vector.broadcast %cst_4 : f32 to vector<16x128xf32>
    %25 = arith.maximumf %23, %24 : vector<16x128xf32>
    %26 = arith.addf %20, %25 : vector<16x128xf32>
    %27 = vector.extract_strided_slice %1 {offsets = [4, 0], sizes = [1, 128], strides = [1, 1]} : vector<16x128xf32> to vector<1x128xf32>
    %28 = vector.broadcast %27 : vector<1x128xf32> to vector<16x128xf32>
    %29 = arith.subf %28, %1 : vector<16x128xf32>
    %cst_5 = arith.constant 0.000000e+00 : f32
    %30 = vector.broadcast %cst_5 : f32 to vector<16x128xf32>
    %31 = arith.maximumf %29, %30 : vector<16x128xf32>
    %32 = arith.addf %26, %31 : vector<16x128xf32>
    %33 = vector.extract_strided_slice %1 {offsets = [5, 0], sizes = [1, 128], strides = [1, 1]} : vector<16x128xf32> to vector<1x128xf32>
    %34 = vector.broadcast %33 : vector<1x128xf32> to vector<16x128xf32>
    %35 = arith.subf %34, %1 : vector<16x128xf32>
    %cst_6 = arith.constant 0.000000e+00 : f32
    %36 = vector.broadcast %cst_6 : f32 to vector<16x128xf32>
    %37 = arith.maximumf %35, %36 : vector<16x128xf32>
    %38 = arith.addf %32, %37 : vector<16x128xf32>
    %39 = vector.extract_strided_slice %1 {offsets = [6, 0], sizes = [1, 128], strides = [1, 1]} : vector<16x128xf32> to vector<1x128xf32>
    %40 = vector.broadcast %39 : vector<1x128xf32> to vector<16x128xf32>
    %41 = arith.subf %40, %1 : vector<16x128xf32>
    %cst_7 = arith.constant 0.000000e+00 : f32
    %42 = vector.broadcast %cst_7 : f32 to vector<16x128xf32>
    %43 = arith.maximumf %41, %42 : vector<16x128xf32>
    %44 = arith.addf %38, %43 : vector<16x128xf32>
    %45 = vector.extract_strided_slice %1 {offsets = [7, 0], sizes = [1, 128], strides = [1, 1]} : vector<16x128xf32> to vector<1x128xf32>
    %46 = vector.broadcast %45 : vector<1x128xf32> to vector<16x128xf32>
    %47 = arith.subf %46, %1 : vector<16x128xf32>
    %cst_8 = arith.constant 0.000000e+00 : f32
    %48 = vector.broadcast %cst_8 : f32 to vector<16x128xf32>
    %49 = arith.maximumf %47, %48 : vector<16x128xf32>
    %50 = arith.addf %44, %49 : vector<16x128xf32>
    %51 = vector.extract_strided_slice %1 {offsets = [8, 0], sizes = [1, 128], strides = [1, 1]} : vector<16x128xf32> to vector<1x128xf32>
    %52 = vector.broadcast %51 : vector<1x128xf32> to vector<16x128xf32>
    %53 = arith.subf %52, %1 : vector<16x128xf32>
    %cst_9 = arith.constant 0.000000e+00 : f32
    %54 = vector.broadcast %cst_9 : f32 to vector<16x128xf32>
    %55 = arith.maximumf %53, %54 : vector<16x128xf32>
    %56 = arith.addf %50, %55 : vector<16x128xf32>
    %57 = vector.extract_strided_slice %1 {offsets = [9, 0], sizes = [1, 128], strides = [1, 1]} : vector<16x128xf32> to vector<1x128xf32>
    %58 = vector.broadcast %57 : vector<1x128xf32> to vector<16x128xf32>
    %59 = arith.subf %58, %1 : vector<16x128xf32>
    %cst_10 = arith.constant 0.000000e+00 : f32
    %60 = vector.broadcast %cst_10 : f32 to vector<16x128xf32>
    %61 = arith.maximumf %59, %60 : vector<16x128xf32>
    %62 = arith.addf %56, %61 : vector<16x128xf32>
    %63 = vector.extract_strided_slice %1 {offsets = [10, 0], sizes = [1, 128], strides = [1, 1]} : vector<16x128xf32> to vector<1x128xf32>
    %64 = vector.broadcast %63 : vector<1x128xf32> to vector<16x128xf32>
    %65 = arith.subf %64, %1 : vector<16x128xf32>
    %cst_11 = arith.constant 0.000000e+00 : f32
    %66 = vector.broadcast %cst_11 : f32 to vector<16x128xf32>
    %67 = arith.maximumf %65, %66 : vector<16x128xf32>
    %68 = arith.addf %62, %67 : vector<16x128xf32>
    %69 = vector.extract_strided_slice %1 {offsets = [11, 0], sizes = [1, 128], strides = [1, 1]} : vector<16x128xf32> to vector<1x128xf32>
    %70 = vector.broadcast %69 : vector<1x128xf32> to vector<16x128xf32>
    %71 = arith.subf %70, %1 : vector<16x128xf32>
    %cst_12 = arith.constant 0.000000e+00 : f32
    %72 = vector.broadcast %cst_12 : f32 to vector<16x128xf32>
    %73 = arith.maximumf %71, %72 : vector<16x128xf32>
    %74 = arith.addf %68, %73 : vector<16x128xf32>
    %75 = vector.extract_strided_slice %1 {offsets = [12, 0], sizes = [1, 128], strides = [1, 1]} : vector<16x128xf32> to vector<1x128xf32>
    %76 = vector.broadcast %75 : vector<1x128xf32> to vector<16x128xf32>
    %77 = arith.subf %76, %1 : vector<16x128xf32>
    %cst_13 = arith.constant 0.000000e+00 : f32
    %78 = vector.broadcast %cst_13 : f32 to vector<16x128xf32>
    %79 = arith.maximumf %77, %78 : vector<16x128xf32>
    %80 = arith.addf %74, %79 : vector<16x128xf32>
    %81 = vector.extract_strided_slice %1 {offsets = [13, 0], sizes = [1, 128], strides = [1, 1]} : vector<16x128xf32> to vector<1x128xf32>
    %82 = vector.broadcast %81 : vector<1x128xf32> to vector<16x128xf32>
    %83 = arith.subf %82, %1 : vector<16x128xf32>
    %cst_14 = arith.constant 0.000000e+00 : f32
    %84 = vector.broadcast %cst_14 : f32 to vector<16x128xf32>
    %85 = arith.maximumf %83, %84 : vector<16x128xf32>
    %86 = arith.addf %80, %85 : vector<16x128xf32>
    %87 = vector.extract_strided_slice %1 {offsets = [14, 0], sizes = [1, 128], strides = [1, 1]} : vector<16x128xf32> to vector<1x128xf32>
    %88 = vector.broadcast %87 : vector<1x128xf32> to vector<16x128xf32>
    %89 = arith.subf %88, %1 : vector<16x128xf32>
    %cst_15 = arith.constant 0.000000e+00 : f32
    %90 = vector.broadcast %cst_15 : f32 to vector<16x128xf32>
    %91 = arith.maximumf %89, %90 : vector<16x128xf32>
    %92 = arith.addf %86, %91 : vector<16x128xf32>
    %93 = vector.extract_strided_slice %1 {offsets = [15, 0], sizes = [1, 128], strides = [1, 1]} : vector<16x128xf32> to vector<1x128xf32>
    %94 = vector.broadcast %93 : vector<1x128xf32> to vector<16x128xf32>
    %95 = arith.subf %94, %1 : vector<16x128xf32>
    %cst_16 = arith.constant 0.000000e+00 : f32
    %96 = vector.broadcast %cst_16 : f32 to vector<16x128xf32>
    %97 = arith.maximumf %95, %96 : vector<16x128xf32>
    %98 = arith.addf %92, %97 : vector<16x128xf32>
    %cst_17 = arith.constant 1.000000e+00 : f32
    %99 = vector.broadcast %cst_17 : f32 to vector<16x128xf32>
    %100 = arith.cmpf olt, %98, %99 : vector<16x128xf32>
    %cst_18 = arith.constant 1.000000e+00 : f32
    %cst_19 = arith.constant 0.000000e+00 : f32
    %101 = vector.broadcast %cst_18 : f32 to vector<16x128xf32>
    %102 = vector.broadcast %cst_19 : f32 to vector<16x128xf32>
    %103 = arith.select %100, %101, %102 : vector<16x128xi1>, vector<16x128xf32>
    %cst_20 = arith.constant dense<0.000000e+00> : vector<128xf32>
    %104 = vector.multi_reduction <add>, %103, %cst_20 [0] : vector<16x128xf32> to vector<128xf32>
    %105 = vector.shape_cast %104 : vector<128xf32> to vector<1x128xf32>
    %cst_21 = arith.constant 0.000000e+00 : f32
    %106 = vector.broadcast %cst_21 : f32 to vector<16x128xf32>
    %107 = arith.select %100, %1, %106 : vector<16x128xi1>, vector<16x128xf32>
    %cst_22 = arith.constant dense<0.000000e+00> : vector<128xf32>
    %108 = vector.multi_reduction <add>, %107, %cst_22 [0] : vector<16x128xf32> to vector<128xf32>
    %109 = vector.shape_cast %108 : vector<128xf32> to vector<1x128xf32>
    %cst_23 = arith.constant 1.000000e+00 : f32
    %110 = vector.broadcast %cst_23 : f32 to vector<1x128xf32>
    %111 = arith.subf %109, %110 : vector<1x128xf32>
    %112 = arith.divf %111, %105 : vector<1x128xf32>
    %113 = vector.broadcast %112 : vector<1x128xf32> to vector<16x128xf32>
    %114 = arith.subf %1, %113 : vector<16x128xf32>
    %cst_24 = arith.constant 0.000000e+00 : f32
    %115 = vector.broadcast %cst_24 : f32 to vector<16x128xf32>
    %116 = arith.maximumf %114, %115 : vector<16x128xf32>
    %cst_25 = arith.constant 1.000000e+00 : f32
    %117 = vector.broadcast %cst_25 : f32 to vector<16x128xf32>
    %118 = arith.mulf %116, %117 : vector<16x128xf32>
    %119 = tpu.transpose %118, [1, 0] : vector<16x128xf32> -> vector<128x16xf32>
    %c0_26 = arith.constant 0 : index
    %c0_27 = arith.constant 0 : index
    %120 = vector.load %arg2[%c0_26, %c0_27] : memref<128x16xf32, #tpu.memory_space<vmem>>, vector<128x16xf32>
    tpu.vector_store %arg2[%c0_26, %c0_27], %119 {strides = array<i32>} : memref<128x16xf32, #tpu.memory_space<vmem>>, vector<128x16xf32>,
    return
  }
  func.func @transform_0(%arg0: i32) -> (i32, i32) {
    %c0_i32 = arith.constant 0 : i32
    %c0_i32_0 = arith.constant 0 : i32
    %c0_i32_1 = arith.constant 0 : i32
    return %c0_i32, %c0_i32_0 : i32, i32
  }
  func.func @transform_1(%arg0: i32) -> (i32, i32) {
    %c0_i32 = arith.constant 0 : i32
    %c0_i32_0 = arith.constant 0 : i32
    %c0_i32_1 = arith.constant 0 : i32
    return %c0_i32, %c0_i32_0 : i32, i32
  }
}

</mosaic_0001>

<bundles_post_ra>
// kernel: tpu_custom_call.1
= control target key start
LH: loop header
LB: loop body
LE: loop exit
PB: predicated region body
PF: predicated region fallthrough
CT: control target
= control target key end

     0   :  { %6 = vsyncpa [#allocation3], 0  ;;  %s527_s0 = inlined_call_operand.hbm [shape: f32[128,16], index: 0, kind: input, shape index: {}]   ;;  %s528_s1 = inlined_call_operand.hbm [shape: f32[128,16], index: 1, kind: output, shape index: {}]  }
   0x1   :  { %7 = vsyncpa [#allocation4], 0  ;;  %s380_s6 = smov [#allocation2]   ;;  %s332_s10 = scalar_lea.hbm %s527_s0, 2048 }
   0x2   :  { %s13_s7 = sshll.u32 %s380_s6, 4  ;;  %p333_p0 = scmp.ne.s32.totalorder %s527_s0, %s332_s10  ;;  %s14_s7 = int_to_ptr.vmem [resolvable:$true] %s13_s7 }
   0x3   :  { %p336_p1 = scmp.lt.u32.totalorder %s332_s10, %s527_s0 }
   0x5   :  { %p338_p2 = pnand %p336_p1, %p333_p0 }
   0x7   :  { %341 = shalt.err (!%p338_p2)
}
   0x8   :  { %s342_s15 = scalar_lea.vmem %s14_s7, 2048  ;;  %p347_p4 = scmp.lt.s32.totalorder %s14_s7, %s14_s7 }
   0x9   :  { %p343_p3 = scmp.ne.s32.totalorder %s14_s7, %s342_s15  ;;  %p348_p5 = scmp.lt.s32.totalorder %s342_s15, %s342_s15 }
   0xb   :  { %p349_p6 = por %p348_p5, %p347_p4 }
   0xd   :  { %p350_p7 = pnand %p349_p6, %p343_p3 }
   0xf   :  { %353 = shalt.err (!%p350_p7)
}
  0x10   :  { %s381_s16 = smov 128   ;;  %s382_s17 = smov 8  }
  0x11   :  { %19 = dma.hbm_to_vmem [thread:$0]  %s527_s0, 2048, %s14_s7, [#allocation3], %s381_s16, %s381_s16, %s382_s17  }
  0x12   :  { %376 = dma.done.wait [#allocation3], 2048  }
  0x13   :  { %377 = vsyncadd [#allocation3], 4294965248  ;;  %v23_v0 = vld [vmem:[#allocation2] sm:$0xff]  ;;  %v24_v1 = vld [vmem:[#allocation2 + $0x8] sm:$0xff]  ;;  %v71_v16 = vlaneseq  ;;  %vm290_vm2 = vcmask 130048   ;;  %s384_s0 = smov [#allocation5]  }
  0x14   :  { %39 = vxpose.xlu0.b32.start [1/16] (narrow) %v23_v0, 16  ;;  %v25_v2 = vld [vmem:[#allocation2 + $0x10] sm:$0xff]  ;;  %v26_v3 = vld [vmem:[#allocation2 + $0x18] sm:$0xff]  ;;  %v27_v4 = vld [vmem:[#allocation2 + $0x20] sm:$0xff]  ;;  %s312_s20 = sshll.u32 %s384_s0, 4  ;;  %s313_s20 = int_to_ptr.vmem [resolvable:$true] %s312_s20 }
  0x15   :  { %v28_v5 = vld [vmem:[#allocation2 + $0x28] sm:$0xff]  ;;  %v29_v6 = vld [vmem:[#allocation2 + $0x30] sm:$0xff]  ;;  %v30_v7 = vld [vmem:[#allocation2 + $0x38] sm:$0xff]  ;;  %v410_v17 = vshrl.u32 %v71_v16, 7  ;;  %s354_s21 = scalar_lea.vmem %s313_s20, 2048  ;;  %p359_p9 = scmp.lt.s32.totalorder %s313_s20, %s313_s20 }
  0x16   :  { %v31_v8 = vld [vmem:[#allocation2 + $0x40] sm:$0xff]  ;;  %v32_v9 = vld [vmem:[#allocation2 + $0x48] sm:$0xff]  ;;  %v33_v10 = vld [vmem:[#allocation2 + $0x50] sm:$0xff]  ;;  %p355_p8 = scmp.ne.s32.totalorder %s313_s20, %s354_s21  ;;  %p360_p10 = scmp.lt.s32.totalorder %s354_s21, %s354_s21 }
  0x17   :  { %v34_v11 = vld [vmem:[#allocation2 + $0x58] sm:$0xff]  ;;  %v35_v12 = vld [vmem:[#allocation2 + $0x60] sm:$0xff]  ;;  %v36_v13 = vld [vmem:[#allocation2 + $0x68] sm:$0xff]  ;;  %v73_v18 = vsub.s32 0, %v410_v17  ;;  %v83_v19 = vsub.s32 1, %v410_v17  ;;  %v93_v20 = vsub.s32 2, %v410_v17 }
  0x18   :  { %40 = vxpose.xlu0.b32.cont [2/16] (narrow) %v24_v1, 16  ;;  %v37_v14 = vld [vmem:[#allocation2 + $0x70] sm:$0xff]  ;;  %v38_v15 = vld [vmem:[#allocation2 + $0x78] sm:$0xff]  ;;  %v103_v21 = vsub.s32 3, %v410_v17  ;;  %v113_v22 = vsub.s32 4, %v410_v17  ;;  %v123_v24 = vsub.s32 5, %v410_v17  ;;  %p361_p11 = por %p360_p10, %p359_p9 }
  0x19   :  { %v133_v30 = vsub.s32 6, %v410_v17  ;;  %v143_v37 = vsub.s32 7, %v410_v17 }
  0x1a   :  { %p362_p12 = pnand %p361_p11, %p355_p8 }
  0x1c   :  { %41 = vxpose.xlu0.b32.cont [3/16] (narrow) %v25_v2, 16 }
  0x20   :  { %42 = vxpose.xlu0.b32.cont [4/16] (narrow) %v26_v3, 16 }
  0x24   :  { %43 = vxpose.xlu0.b32.cont [5/16] (narrow) %v27_v4, 16 }
  0x28   :  { %44 = vxpose.xlu0.b32.cont [6/16] (narrow) %v28_v5, 16 }
  0x2c   :  { %45 = vxpose.xlu0.b32.cont [7/16] (narrow) %v29_v6, 16 }
  0x30   :  { %46 = vxpose.xlu0.b32.cont [8/16] (narrow) %v30_v7, 16 }
  0x34   :  { %47 = vxpose.xlu0.b32.cont [9/16] (narrow) %v31_v8, 16 }
  0x38   :  { %48 = vxpose.xlu0.b32.cont [10/16] (narrow) %v32_v9, 16 }
  0x3c   :  { %49 = vxpose.xlu0.b32.cont [11/16] (narrow) %v33_v10, 16 }
  0x40   :  { %50 = vxpose.xlu0.b32.cont [12/16] (narrow) %v34_v11, 16 }
  0x44   :  { %51 = vxpose.xlu0.b32.cont [13/16] (narrow) %v35_v12, 16 }
  0x48   :  { %52 = vxpose.xlu0.b32.cont [14/16] (narrow) %v36_v13, 16 }
  0x4c   :  { %53 = vxpose.xlu0.b32.cont [15/16] (narrow) %v37_v14, 16 }
  0x50   :  { %54 = vxpose.xlu0.b32.end [16/16] (narrow) %v38_v15, 16 }
  0x94   :  { %v417_v23 = vpop.trf.xlu0 }
  0x95   :  { %v74_v25 = vrot.slane %v417_v23, %v73_v18  ;;  %v84_v26 = vrot.slane %v417_v23, %v83_v19  ;;  %v94_v27 = vrot.slane %v417_v23, %v93_v20  ;;  %v104_v28 = vrot.slane %v417_v23, %v103_v21 }
  0x96   :  { %v114_v29 = vrot.slane %v417_v23, %v113_v22  ;;  %v124_v36 = vrot.slane %v417_v23, %v123_v24  ;;  %v134_v45 = vrot.slane %v417_v23, %v133_v30  ;;  %v144_v52 = vrot.slane %v417_v23, %v143_v37 }
  0x97   :  { %v75_v31 = vsub.f32 %v74_v25, %v417_v23  ;;  %v85_v32 = vsub.f32 %v84_v26, %v417_v23  ;;  %v95_v33 = vsub.f32 %v94_v27, %v417_v23  ;;  %v105_v35 = vsub.f32 %v104_v28, %v417_v23 }
  0x98   :  { %v433_v34 = vpop.trf.xlu0  ;;  %v115_v44 = vsub.f32 %v114_v29, %v417_v23  ;;  %v125_v51 = vsub.f32 %v124_v36, %v417_v23  ;;  %v135_v59 = vsub.f32 %v134_v45, %v417_v23  ;;  %v145_v2 = vsub.f32 %v144_v52, %v417_v23 }
  0x99   :  { %v76_v38 = vsub.f32 %v74_v25, %v433_v34  ;;  %v77_v39 = vmax.f32 %v75_v31, 0.0  ;;  %v86_v40 = vsub.f32 %v84_v26, %v433_v34  ;;  %v87_v41 = vmax.f32 %v85_v32, 0.0 }
  0x9a   :  { %v96_v42 = vsub.f32 %v94_v27, %v433_v34  ;;  %v106_v43 = vsub.f32 %v104_v28, %v433_v34  ;;  %v97_v49 = vmax.f32 %v95_v33, 0.0  ;;  %v116_v50 = vsub.f32 %v114_v29, %v433_v34 }
  0x9b   :  { %v78_v46 = vmax.f32 %v76_v38, 0.0  ;;  %v88_v47 = vmax.f32 %v86_v40, 0.0  ;;  %v89_v48 = vadd.f32 %v87_v41, %v77_v39  ;;  %v107_v56 = vmax.f32 %v105_v35, 0.0 }
  0x9c   :  { %v98_v54 = vmax.f32 %v96_v42, 0.0  ;;  %v108_v57 = vmax.f32 %v106_v43, 0.0  ;;  %v126_v58 = vsub.f32 %v124_v36, %v433_v34  ;;  %v117_v62 = vmax.f32 %v115_v44, 0.0 }
  0x9d   :  { %v90_v53 = vadd.f32 %v88_v47, %v78_v46  ;;  %v99_v55 = vadd.f32 %v97_v49, %v89_v48  ;;  %v154_v63 = vrot.slane %v433_v34, %v73_v18  ;;  %v118_v0 = vmax.f32 %v116_v50, 0.0 }
  0x9e   :  { %v136_v1 = vsub.f32 %v134_v45, %v433_v34  ;;  %v127_v5 = vmax.f32 %v125_v51, 0.0  ;;  %v164_v6 = vrot.slane %v433_v34, %v83_v19  ;;  %v128_v7 = vmax.f32 %v126_v58, 0.0 }
  0x9f   :  { %v100_v60 = vadd.f32 %v98_v54, %v90_v53  ;;  %v109_v61 = vadd.f32 %v107_v56, %v99_v55  ;;  %v146_v8 = vsub.f32 %v144_v52, %v433_v34  ;;  %v174_v9 = vrot.slane %v433_v34, %v93_v20 }
  0xa0   :  { %v137_v12 = vmax.f32 %v135_v59, 0.0  ;;  %v155_v13 = vsub.f32 %v154_v63, %v417_v23  ;;  %v138_v14 = vmax.f32 %v136_v1, 0.0  ;;  %v147_v15 = vmax.f32 %v145_v2, 0.0 }
  0xa1   :  { %v110_v3 = vadd.f32 %v108_v57, %v100_v60  ;;  %v119_v4 = vadd.f32 %v117_v62, %v109_v61  ;;  %v156_v16 = vsub.f32 %v154_v63, %v433_v34  ;;  %v165_v26 = vsub.f32 %v164_v6, %v417_v23 }
  0xa2   :  { %v184_v19 = vrot.slane %v433_v34, %v103_v21  ;;  %v148_v27 = vmax.f32 %v146_v8, 0.0  ;;  %v166_v20 = vsub.f32 %v164_v6, %v433_v34  ;;  %v175_v28 = vsub.f32 %v174_v9, %v417_v23 }
  0xa3   :  { %v120_v10 = vadd.f32 %v118_v0, %v110_v3  ;;  %v129_v11 = vadd.f32 %v127_v5, %v119_v4  ;;  %v157_v32 = vmax.f32 %v155_v13, 0.0  ;;  %v194_v33 = vrot.slane %v433_v34, %v113_v22 }
  0xa4   :  { %v158_v35 = vmax.f32 %v156_v16, 0.0  ;;  %v176_v36 = vsub.f32 %v174_v9, %v433_v34  ;;  %v204_v38 = vrot.slane %v433_v34, %v123_v24  ;;  %v167_v40 = vmax.f32 %v165_v26, 0.0 }
  0xa5   :  { %v130_v18 = vadd.f32 %v128_v7, %v120_v10  ;;  %v139_v25 = vadd.f32 %v137_v12, %v129_v11  ;;  %v185_v41 = vsub.f32 %v184_v19, %v417_v23  ;;  %v168_v42 = vmax.f32 %v166_v20, 0.0 }
  0xa6   :  { %v177_v43 = vmax.f32 %v175_v28, 0.0  ;;  %v186_v44 = vsub.f32 %v184_v19, %v433_v34  ;;  %v195_v22 = vsub.f32 %v194_v33, %v417_v23  ;;  %v214_v47 = vrot.slane %v433_v34, %v133_v30 }
  0xa7   :  { %v140_v29 = vadd.f32 %v138_v14, %v130_v18  ;;  %v149_v31 = vadd.f32 %v147_v15, %v139_v25  ;;  %v178_v48 = vmax.f32 %v176_v36, 0.0  ;;  %v196_v24 = vsub.f32 %v194_v33, %v433_v34 }
  0xa8   :  { %v205_v49 = vsub.f32 %v204_v38, %v417_v23  ;;  %v187_v52 = vmax.f32 %v185_v41, 0.0  ;;  %v224_v53 = vrot.slane %v433_v34, %v143_v37  ;;  %v188_v54 = vmax.f32 %v186_v44, 0.0 }
  0xa9   :  { %v150_v21 = vadd.f32 %v148_v27, %v140_v29  ;;  %v159_v39 = vadd.f32 %v157_v32, %v149_v31  ;;  %v206_v55 = vsub.f32 %v204_v38, %v433_v34  ;;  %v197_v58 = vmax.f32 %v195_v22, 0.0 }
  0xaa   :  { %v215_v30 = vsub.f32 %v214_v47, %v417_v23  ;;  %v198_v59 = vmax.f32 %v196_v24, 0.0  ;;  %v207_v60 = vmax.f32 %v205_v49, 0.0  ;;  %v216_v63 = vsub.f32 %v214_v47, %v433_v34 }
  0xab   :  { %v160_v45 = vadd.f32 %v158_v35, %v150_v21  ;;  %v169_v46 = vadd.f32 %v167_v40, %v159_v39  ;;  %v225_v0 = vsub.f32 %v224_v53, %v417_v23  ;;  %v208_v1 = vmax.f32 %v206_v55, 0.0 }
  0xac   :  { %v217_v37 = vmax.f32 %v215_v30, 0.0  ;;  %v226_v3 = vsub.f32 %v224_v53, %v433_v34  ;;  %v218_v5 = vmax.f32 %v216_v63, 0.0  ;;  %v383_v12 = vmov 0.0  }
  0xad   :  { %v170_v50 = vadd.f32 %v168_v42, %v160_v45  ;;  %v179_v51 = vadd.f32 %v177_v43, %v169_v46  ;;  %v227_v7 = vmax.f32 %v225_v0, 0.0 }
  0xae   :  { %v228_v9 = vmax.f32 %v226_v3, 0.0 }
  0xaf   :  { %v180_v56 = vadd.f32 %v178_v48, %v170_v50  ;;  %v189_v57 = vadd.f32 %v187_v52, %v179_v51 }
  0xb1   :  { %v190_v61 = vadd.f32 %v188_v54, %v180_v56  ;;  %v199_v62 = vadd.f32 %v197_v58, %v189_v57 }
  0xb3   :  { %v200_v17 = vadd.f32 %v198_v59, %v190_v61  ;;  %v209_v2 = vadd.f32 %v207_v60, %v199_v62 }
  0xb5   :  { %v210_v4 = vadd.f32 %v208_v1, %v200_v17  ;;  %v219_v6 = vadd.f32 %v217_v37, %v209_v2 }
  0xb7   :  { %v220_v8 = vadd.f32 %v218_v5, %v210_v4  ;;  %v229_v10 = vadd.f32 %v227_v7, %v219_v6 }
  0xb9   :  { %v230_v11 = vadd.f32 %v228_v9, %v220_v8  ;;  %vm231_vm0 = vcmp.lt.f32.partialorder %v229_v10, 1.0 }
  0xba   :  { %v233_v13 = vsel %vm231_vm0, 1.0, %v383_v12  ;;  %v242_v15 = vsel %vm231_vm0, %v417_v23, 0.0 }
  0xbb   :  { %vm232_vm1 = vcmp.lt.f32.partialorder %v230_v11, 1.0 }
  0xbc   :  { %v234_v14 = vsel %vm232_vm1, 1.0, %v383_v12  ;;  %v243_v16 = vsel %vm232_vm1, %v433_v34, 0.0 }
  0xbd   :  { %v235_v18 = vadd.f32 %v234_v14, %v233_v13  ;;  %v244_v25 = vadd.f32 %v243_v16, %v242_v15 }
  0xbf   :  { %v236_v26 = vrot.slane %v235_v18, 4  ;;  %v245_v19 = vrot.slane %v244_v25, 4 }
  0xc1   :  { %v237_v27 = vadd.f32 %v236_v26, %v235_v18  ;;  %v246_v20 = vadd.f32 %v245_v19, %v244_v25 }
  0xc3   :  { %v238_v28 = vrot.slane %v237_v27, 2  ;;  %v247_v29 = vrot.slane %v246_v20, 2 }
  0xc5   :  { %v239_v31 = vadd.f32 %v238_v28, %v237_v27  ;;  %v248_v33 = vadd.f32 %v247_v29, %v246_v20 }
  0xc7   :  { %v240_v32 = vrot.slane %v239_v31, 1  ;;  %v249_v36 = vrot.slane %v248_v33, 1 }
  0xc9   :  { %v241_v35 = vadd.f32 %v240_v32, %v239_v31  ;;  %v250_v38 = vadd.f32 %v249_v36, %v248_v33 }
  0xcb   :  { %330 = vrcp.f32 %v241_v35  ;;  %v324_v21 = vadd.f32 -1.0, %v250_v38 }
  0xd5   :  { %v331_v39 = vpop.eup %330 }
  0xd6   :  { %v253_v40 = vmul.f32 %v331_v39, %v324_v21 }
  0xd8   :  { %v254_v41 = vsub.f32 %v417_v23, %v253_v40  ;;  %v255_v43 = vsub.f32 %v433_v34, %v253_v40 }
  0xda   :  { %v256_v42 = vmax.f32 %v254_v41, 0.0  ;;  %v257_v44 = vmax.f32 %v255_v43, 0.0 }
  0xdc   :  { %258 = vxpose.xlu1.b32.start [1/2] (short) %v256_v42, 128 }
  0xe0   :  { %259 = vxpose.xlu1.b32.end [2/2] (short) %v257_v44, 128 }
 0x15c   :  { %v274_v45 = vpop.trf.xlu1 }
 0x15d   :  { %291 = vst.msk [vmem:[#allocation5] sm:$0xff] %vm290_vm2, %v274_v45 }
 0x160   :  { %v275_v46 = vpop.trf.xlu1 }
 0x161   :  { %292 = vst.msk [vmem:[#allocation5 + $0x8] sm:$0xff] %vm290_vm2, %v275_v46 }
 0x164   :  { %v276_v22 = vpop.trf.xlu1 }
 0x165   :  { %293 = vst.msk [vmem:[#allocation5 + $0x10] sm:$0xff] %vm290_vm2, %v276_v22 }
 0x168   :  { %v277_v47 = vpop.trf.xlu1 }
 0x169   :  { %294 = vst.msk [vmem:[#allocation5 + $0x18] sm:$0xff] %vm290_vm2, %v277_v47 }
 0x16c   :  { %v278_v23 = vpop.trf.xlu1 }
 0x16d   :  { %295 = vst.msk [vmem:[#allocation5 + $0x20] sm:$0xff] %vm290_vm2, %v278_v23 }
 0x170   :  { %v279_v34 = vpop.trf.xlu1 }
 0x171   :  { %296 = vst.msk [vmem:[#allocation5 + $0x28] sm:$0xff] %vm290_vm2, %v279_v34 }
 0x174   :  { %v280_v48 = vpop.trf.xlu1 }
 0x175   :  { %297 = vst.msk [vmem:[#allocation5 + $0x30] sm:$0xff] %vm290_vm2, %v280_v48 }
 0x178   :  { %v281_v24 = vpop.trf.xlu1 }
 0x179   :  { %298 = vst.msk [vmem:[#allocation5 + $0x38] sm:$0xff] %vm290_vm2, %v281_v24 }
 0x17c   :  { %v282_v49 = vpop.trf.xlu1 }
 0x17d   :  { %299 = vst.msk [vmem:[#allocation5 + $0x40] sm:$0xff] %vm290_vm2, %v282_v49 }
 0x180   :  { %v283_v50 = vpop.trf.xlu1 }
 0x181   :  { %300 = vst.msk [vmem:[#allocation5 + $0x48] sm:$0xff] %vm290_vm2, %v283_v50 }
 0x184   :  { %v284_v51 = vpop.trf.xlu1 }
 0x185   :  { %301 = vst.msk [vmem:[#allocation5 + $0x50] sm:$0xff] %vm290_vm2, %v284_v51 }
 0x188   :  { %v285_v52 = vpop.trf.xlu1 }
 0x189   :  { %302 = vst.msk [vmem:[#allocation5 + $0x58] sm:$0xff] %vm290_vm2, %v285_v52 }
 0x18c   :  { %v286_v53 = vpop.trf.xlu1 }
 0x18d   :  { %303 = vst.msk [vmem:[#allocation5 + $0x60] sm:$0xff] %vm290_vm2, %v286_v53 }
 0x190   :  { %v287_v54 = vpop.trf.xlu1 }
 0x191   :  { %304 = vst.msk [vmem:[#allocation5 + $0x68] sm:$0xff] %vm290_vm2, %v287_v54 }
 0x194   :  { %v288_v55 = vpop.trf.xlu1 }
 0x195   :  { %305 = vst.msk [vmem:[#allocation5 + $0x70] sm:$0xff] %vm290_vm2, %v288_v55 }
 0x198   :  { %v289_v56 = vpop.trf.xlu1 }
 0x199   :  { %306 = vst.msk [vmem:[#allocation5 + $0x78] sm:$0xff] %vm290_vm2, %v289_v56 }
 0x19a   :  { %365 = shalt.err (!%p362_p12)
}
 0x19b   :  { %s366_s24 = scalar_lea.hbm %s528_s1, 2048 }
 0x19c   :  { %p367_p13 = scmp.ne.s32.totalorder %s528_s1, %s366_s24  ;;  %p370_p0 = scmp.lt.u32.totalorder %s366_s24, %s528_s1 }
 0x19e   :  { %p372_p1 = pnand %p370_p0, %p367_p13 }
 0x1a0   :  { %375 = shalt.err (!%p372_p1)
}
 0x1a1   :  { %318 = dma.vmem_to_hbm [thread:$0]  %s313_s20, 2048, %s528_s1, [#allocation4], %s381_s16, %s381_s16, %s382_s17  }
 0x1a2   :  { %378 = dma.done.wait [#allocation4], 2048  }
 0x1a3   :  { %379 = vsyncadd [#allocation4], 4294965248 }
 0x1a4   :  { %322 = vsyncpa [#allocation3], 1 }
 0x1a5   :  { %323 = vsyncpa [#allocation4], 1 }

</bundles_post_ra>
